<compile_context>
chip_gen: v5e
topology: v5e:2x2
jax: 0.10.0
libtpu: 0.0.40
codegen_flags: <defaults>
</compile_context>

<pallas_src>
import functools

import jax
import jax.numpy as jnp
from jax import lax
from jax.experimental import pallas as pl
from jax.experimental.pallas import tpu as pltpu


def _round_up(x: int, m: int) -> int:
    return ((x + m - 1) // m) * m


def _cdiv(a: int, b: int) -> int:
    return (a + b - 1) // b


_TRANSCENDENTAL_ACTS = ("silu", "swish", "gelu", "elu", "mish", "tanh")


def _activate(y, activation):
    """Pure-jnp activations usable both inside the Pallas kernel and in the reference."""
    if activation is None:
        return y
    if activation == "relu":
        return jnp.maximum(y, 0.0)
    if activation == "lrelu":
        return jnp.where(y > 0, y, 0.2 * y)
    if activation in ("silu", "swish"):
        return y * (1.0 / (1.0 + jnp.exp(-y)))
    if activation == "gelu":
        # TODO(synk): nn.GELU() default is the exact erf form; tanh approximation used here.
        c = 0.7978845608028654
        return 0.5 * y * (1.0 + jnp.tanh(c * (y + 0.044715 * y * y * y)))
    if activation == "elu":
        return jnp.where(y > 0, y, jnp.exp(y) - 1.0)
    if activation == "mish":
        return y * jnp.tanh(jnp.log(1.0 + jnp.exp(y)))
    if activation == "tanh":
        return jnp.tanh(y)
    # TODO(synk): 'prelu' needs an extra learned negative-slope parameter; not plumbed.
    raise ValueError(f"unsupported activation: {activation}")


def _linear_norm_kernel(x_ref, w_ref, aff_ref, out_ref, acc_ref, *,
                        use_layer_norm: bool, activation, ln_eps: float, n_valid: int):
    """grid = (row tiles [parallel], K tiles [arbitrary]); epilogue fused at last K step."""
    k = pl.program_id(1)

    @pl.when(k == 0)
    def _():
        acc_ref[...] = jnp.zeros_like(acc_ref)

    # MXU matmul with f32 accumulation: [tm, tk] @ [tk, out_p] -> f32 [tm, out_p]
    acc_ref[...] += jnp.dot(x_ref[...], w_ref[...], preferred_element_type=jnp.float32)

    @pl.when(k == pl.num_programs(1) - 1)
    def _():
        # per-feature shift (bias + folded inference BatchNorm; scale folded into W)
        y = acc_ref[...] + aff_ref[0:1, :]

        if use_layer_norm:
            out_p = y.shape[-1]
            inv_n = 1.0 / float(n_valid)
            if n_valid != out_p:
                # output columns are zero-padded to a lane-dense width; mask the LN stats
                col = lax.broadcasted_iota(jnp.int32, y.shape, 1)
                valid = col < n_valid
                yv = jnp.where(valid, y, 0.0)
                mean = jnp.sum(yv, axis=-1, keepdims=True) * inv_n
                cent = jnp.where(valid, y - mean, 0.0)
            else:
                mean = jnp.mean(y, axis=-1, keepdims=True)
                cent = y - mean
            var = jnp.sum(cent * cent, axis=-1, keepdims=True) * inv_n
            y = cent * lax.rsqrt(var + ln_eps)           # rsqrt -> EUP slot
            y = y * aff_ref[1:2, :] + aff_ref[2:3, :]    # ln_gamma / ln_beta

        y = _activate(y, activation)
        # TODO(synk): train-mode dropout would need pltpu.prng_*; inference is identity.
        out_ref[...] = y.astype(out_ref.dtype)


@functools.partial(jax.jit, static_argnames=(
    "use_bias", "use_batch_norm", "use_layer_norm", "activation",
    "ln_eps", "bn_eps", "tile_m", "tile_k", "compute_dtype"))
def linear_norm_forward(x, params, *, use_bias=True, use_batch_norm=False,
                        use_layer_norm=False, activation=None,
                        ln_eps=1e-5, bn_eps=1e-5, tile_m=512, tile_k=None,
                        compute_dtype=None):
    w = params["weight"]                       # [out_dim, in_dim]
    out_dim, in_dim = w.shape
    lead = x.shape[:-1]

    out_dtype = jnp.dtype(x.dtype)
    cdt = jnp.dtype(compute_dtype) if compute_dtype is not None else jnp.dtype(x.dtype)

    # No up-cast and no row padding: x streams through in its compute dtype and the
    # grid uses cdiv so the (possibly partial) last row tile is handled by Pallas.
    x2 = x.reshape(-1, in_dim)
    if x2.dtype != cdt:
        x2 = x2.astype(cdt)
    M = x2.shape[0]

    # ---- offline weight / per-feature-affine prep (would be done once for inference) ----
    scale = jnp.ones((out_dim,), jnp.float32)
    shift = (params["bias"].astype(jnp.float32) if use_bias
             else jnp.zeros((out_dim,), jnp.float32))
    if use_batch_norm:
        s = params["bn_gamma"].astype(jnp.float32) * lax.rsqrt(
            params["bn_var"].astype(jnp.float32) + bn_eps)
        shift = shift * s + (params["bn_beta"].astype(jnp.float32)
                             - params["bn_mean"].astype(jnp.float32) * s)
        scale = scale * s
    # fold the per-feature scale into the weight columns -> in-kernel epilogue is add-only
    w_t = (w.astype(jnp.float32) * scale[:, None]).T.astype(cdt)     # [in_dim, out_dim]

    # lane-dense output: pad the feature dim to a multiple of 128 (unmasked vst stores)
    out_p = _round_up(out_dim, 128)
    if out_p != out_dim:
        w_t = jnp.pad(w_t, ((0, 0), (0, out_p - out_dim)))           # pad cols -> y == 0
        shift = jnp.pad(shift, (0, out_p - out_dim))

    aff_rows = [shift]
    if use_layer_norm:
        g = params["ln_gamma"].astype(jnp.float32)
        b = params["ln_beta"].astype(jnp.float32)
        if out_p != out_dim:
            g = jnp.pad(g, (0, out_p - out_dim), constant_values=1.0)
            b = jnp.pad(b, (0, out_p - out_dim))
        aff_rows += [g, b]
    aff = jnp.stack(aff_rows, axis=0)          # [1 or 3, out_p] f32 (epilogue stays f32)
    n_aff = aff.shape[0]

    # ---- tiling ----
    cb = cdt.itemsize
    ob = out_dtype.itemsize
    sub = 16 if min(cb, ob) < 4 else 8         # bf16 sublane packing needs multiples of 16

    # K tile: only split when it divides in_dim exactly (a ragged K tile would read
    # garbage into the contraction) and is lane-aligned.
    tk = in_dim
    if tile_k is not None and 0 < tile_k < in_dim and in_dim % tile_k == 0 and tile_k % 128 == 0:
        tk = int(tile_k)
    elif tile_k is None and in_dim >= 2048 and in_dim % 512 == 0:
        tk = 512                               # keeps big weights off-VMEM on v7x (64 MiB/TC)
    k_steps = in_dim // tk

    tm = min(int(tile_m), _round_up(max(M, 1), sub))
    tm = _round_up(tm, sub)
    # v7x megacore: give the "parallel" row axis at least 2 steps when M allows it
    if M > sub and _cdiv(M, tm) < 2:
        tm = _round_up(_cdiv(M, 2), sub)

    def _vmem_bytes(tm_):
        w_bufs = 1 if k_steps == 1 else 2      # weights single-buffered when resident
        return (w_bufs * tk * out_p * cb       # weight tile(s)
                + 2 * tm_ * tk * cb            # x tile, double-buffered
                + 2 * tm_ * out_p * ob         # out tile, double-buffered
                + tm_ * out_p * 4              # f32 accumulator scratch
                + 8 * out_p * 4)               # per-feature rows (sublane-padded)

    budget = 48 * 1024 * 1024                  # fits v7x's 64 MiB/TC with headroom
    while _vmem_bytes(tm) > budget and tm > sub:
        tm = max(sub, _round_up(tm // 2, sub))
    vmem_limit = int(min(max(_vmem_bytes(tm) * 1.4, 16 * 2 ** 20), 100 * 2 ** 20))

    grid = (_cdiv(M, tm), k_steps)             # reduction axis last

    kernel = functools.partial(_linear_norm_kernel,
                               use_layer_norm=bool(use_layer_norm),
                               activation=activation,
                               ln_eps=float(ln_eps),
                               n_valid=int(out_dim))

    # Resident blocks (index map never changes) get a single pipeline buffer.
    if k_steps == 1:
        w_spec = pl.BlockSpec((tk, out_p), lambda i, k: (k, 0),
                              pipeline_mode=pl.Buffered(1))
    else:
        w_spec = pl.BlockSpec((tk, out_p), lambda i, k: (k, 0))
    aff_spec = pl.BlockSpec((n_aff, out_p), lambda i, k: (0, 0),
                            pipeline_mode=pl.Buffered(1))

    transc = (M * out_p if activation in _TRANSCENDENTAL_ACTS else 0)
    if use_layer_norm:
        transc += M
    cost = pl.CostEstimate(
        flops=2 * M * in_dim * out_dim,
        transcendentals=transc,
        bytes_accessed=M * in_dim * cb + in_dim * out_p * cb + n_aff * out_p * 4
                       + M * out_p * ob)

    out = pl.pallas_call(
        kernel,
        out_shape=jax.ShapeDtypeStruct((M, out_p), out_dtype),
        grid=grid,
        in_specs=[
            pl.BlockSpec((tm, tk), lambda i, k: (i, k)),   # x tiles stream over rows & K
            w_spec,
            aff_spec,
        ],
        out_specs=pl.BlockSpec((tm, out_p), lambda i, k: (i, 0)),
        scratch_shapes=[pltpu.VMEM((tm, out_p), jnp.float32)],
        compiler_params=pltpu.CompilerParams(
            dimension_semantics=("parallel", "arbitrary"),
            vmem_limit_bytes=vmem_limit),
        cost_estimate=cost,
    )(x2, w_t, aff)

    if out_p != out_dim:
        out = out[:, :out_dim]
    return out.reshape(*lead, out_dim)


def linear_norm_reference(x, params, *, use_bias=True, use_batch_norm=False,
                          use_layer_norm=False, activation=None,
                          ln_eps=1e-5, bn_eps=1e-5):
    """Pure-JAX reference mirroring the PyTorch LinearNorm forward (eval mode)."""
    hp = lax.Precision.HIGHEST
    y = jnp.einsum("...i,oi->...o", x.astype(jnp.float32),
                   params["weight"].astype(jnp.float32), precision=hp)
    if use_bias:
        y = y + params["bias"]
    if use_batch_norm:
        s = params["bn_gamma"] / jnp.sqrt(params["bn_var"] + bn_eps)
        y = (y - params["bn_mean"]) * s + params["bn_beta"]
    if use_layer_norm:
        mean = jnp.mean(y, axis=-1, keepdims=True)
        var = jnp.mean((y - mean) ** 2, axis=-1, keepdims=True)
        y = (y - mean) / jnp.sqrt(var + ln_eps)
        y = y * params["ln_gamma"] + params["ln_beta"]
    y = _activate(y, activation)
    return y.astype(x.dtype)


def _make_params(key, in_dim, out_dim):
    ks = jax.random.split(key, 8)
    limit = (6.0 / (in_dim + out_dim)) ** 0.5   # xavier_uniform, as in the module init
    return {
        "weight": jax.random.uniform(ks[0], (out_dim, in_dim), jnp.float32, -limit, limit),
        # bias/norm params randomized (instead of the zero/one init) to exercise the paths
        "bias": 0.1 * jax.random.normal(ks[1], (out_dim,), jnp.float32),
        "bn_gamma": 1.0 + 0.1 * jax.random.normal(ks[2], (out_dim,), jnp.float32),
        "bn_beta": 0.1 * jax.random.normal(ks[3], (out_dim,), jnp.float32),
        "bn_mean": 0.1 * jax.random.normal(ks[4], (out_dim,), jnp.float32),
        "bn_var": jax.nn.softplus(jax.random.normal(ks[5], (out_dim,), jnp.float32)) + 0.5,
        "ln_gamma": 1.0 + 0.1 * jax.random.normal(ks[6], (out_dim,), jnp.float32),
        "ln_beta": 0.1 * jax.random.normal(ks[7], (out_dim,), jnp.float32),
    }


if __name__ == "__main__":
    key = jax.random.PRNGKey(0)
    kp1, kp2, kx1, kx2 = jax.random.split(key, 4)
    B, S = 2, 8

    # --- small f32 case: lane-narrow out_dim (exercises column padding + masked LN) ---
    in_dim, out_dim = 32, 64
    params = _make_params(kp1, in_dim, out_dim)
    x = jax.random.normal(kx1, (B, S, in_dim), jnp.float32)
    for cfg in (dict(),                                        # plain Linear + bias
                dict(use_layer_norm=True, activation="relu"),  # Linear + LN + ReLU
                dict(use_batch_norm=True, activation="silu")): # Linear + BN(eval) + SiLU
        out = jax.block_until_ready(linear_norm_forward(x, params, **cfg))
        ref = linear_norm_reference(x, params, **cfg)
        assert out.shape == (B, S, out_dim), (out.shape, cfg)
        assert jnp.allclose(out, ref, rtol=1e-4, atol=1e-4), cfg

    # --- bf16 case: native bf16 MXU path, lane-aligned out_dim, K-tiled accumulation ---
    in_dim2, out_dim2 = 256, 128
    params2 = _make_params(kp2, in_dim2, out_dim2)
    params2_ref = dict(params2)
    params2_ref["weight"] = params2["weight"].astype(jnp.bfloat16).astype(jnp.float32)
    x2 = jax.random.normal(kx2, (B, S, in_dim2), jnp.float32).astype(jnp.bfloat16)
    for cfg in (dict(use_layer_norm=True, activation="gelu"),
                dict(activation="lrelu")):
        out = jax.block_until_ready(
            linear_norm_forward(x2, params2, tile_k=128,
                                compute_dtype=jnp.bfloat16, **cfg))
        ref = linear_norm_reference(x2.astype(jnp.float32), params2_ref, **cfg)
        assert out.shape == (B, S, out_dim2), (out.shape, cfg)
        assert out.dtype == x2.dtype, (out.dtype, cfg)
        assert jnp.allclose(out.astype(jnp.float32), ref.astype(jnp.float32),
                            rtol=2e-2, atol=2e-2), cfg

    print("KERNEL_OK")
</pallas_src>

<mosaic_0001>
module attributes {stable_mosaic.version = 11 : i64} {
  func.func @_linear_norm_kernel(%arg0: i32, %arg1: i32, %arg2: memref<8x32xf32, #tpu.memory_space<vmem>>, %arg3: memref<32x128xf32, #tpu.memory_space<vmem>>, %arg4: memref<1x128xf32, #tpu.memory_space<vmem>>, %arg5: memref<8x128xf32, #tpu.memory_space<vmem>>, %arg6: memref<8x128xf32, #tpu.memory_space<vmem>>) attributes {dimension_semantics = [#tpu.dimension_semantics<parallel>, #tpu.dimension_semantics<arbitrary>], iteration_bounds = array<i64: 2, 1>, scalar_prefetch = 0 : i64, scratch_operands = 1 : i64, tpu.core_type = #tpu.core_type<tc>, window_params = [{transform_indices = @transform_0, window_bounds = array<i64: 8, 32>}, {pipeline_mode = #tpu.pipeline_mode<synchronous>, transform_indices = @transform_1, window_bounds = array<i64: 32, 128>}, {pipeline_mode = #tpu.pipeline_mode<synchronous>, transform_indices = @transform_2, window_bounds = array<i64: 1, 128>}, {transform_indices = @transform_3, window_bounds = array<i64: 8, 128>}]} {
    %c0_i32 = arith.constant 0 : i32
    %0 = arith.cmpi eq, %arg1, %c0_i32 : i32
    %1 = arith.extui %0 : i1 to i32
    %c0_i32_0 = arith.constant 0 : i32
    %2 = arith.cmpi ne, %1, %c0_i32_0 : i32
    scf.if %2 {
      %cst_10 = arith.constant 0.000000e+00 : f32
      %12 = vector.broadcast %cst_10 : f32 to vector<8x128xf32>
      %c0_11 = arith.constant 0 : index
      %c0_12 = arith.constant 0 : index
      %13 = vector.load %arg6[%c0_11, %c0_12] : memref<8x128xf32, #tpu.memory_space<vmem>>, vector<8x128xf32>
      tpu.vector_store %arg6[%c0_11, %c0_12], %12 {strides = array<i32>} : memref<8x128xf32, #tpu.memory_space<vmem>>, vector<8x128xf32>,
    } else {
    }
    %c0 = arith.constant 0 : index
    %c0_1 = arith.constant 0 : index
    %3 = vector.load %arg6[%c0, %c0_1] : memref<8x128xf32, #tpu.memory_space<vmem>>, vector<8x128xf32>
    %c0_2 = arith.constant 0 : index
    %c0_3 = arith.constant 0 : index
    %4 = vector.load %arg2[%c0_2, %c0_3] : memref<8x32xf32, #tpu.memory_space<vmem>>, vector<8x32xf32>
    %c0_4 = arith.constant 0 : index
    %c0_5 = arith.constant 0 : index
    %5 = vector.load %arg3[%c0_4, %c0_5] : memref<32x128xf32, #tpu.memory_space<vmem>>, vector<32x128xf32>
    %cst = arith.constant dense<0.000000e+00> : vector<8x128xf32>
    %6 = tpu.matmul %4, %5, %cst {dimension_numbers = #tpu.dot_dimension_numbers<[1], [0], [0], [1], [0, 0, 1, 1], [], []>} : vector<8x32xf32>, vector<32x128xf32>, vector<8x128xf32> -> vector<8x128xf32>
    %7 = arith.addf %3, %6 : vector<8x128xf32>
    %c0_6 = arith.constant 0 : index
    %c0_7 = arith.constant 0 : index
    %8 = vector.load %arg6[%c0_6, %c0_7] : memref<8x128xf32, #tpu.memory_space<vmem>>, vector<8x128xf32>
    tpu.vector_store %arg6[%c0_6, %c0_7], %7 {strides = array<i32>} : memref<8x128xf32, #tpu.memory_space<vmem>>, vector<8x128xf32>,
    %c0_i32_8 = arith.constant 0 : i32
    %9 = arith.cmpi eq, %arg1, %c0_i32_8 : i32
    %10 = arith.extui %9 : i1 to i32
    %c0_i32_9 = arith.constant 0 : i32
    %11 = arith.cmpi ne, %10, %c0_i32_9 : i32
    scf.if %11 {
      %c0_10 = arith.constant 0 : index
      %c0_11 = arith.constant 0 : index
      %12 = vector.load %arg6[%c0_10, %c0_11] : memref<8x128xf32, #tpu.memory_space<vmem>>, vector<8x128xf32>
      %c0_12 = arith.constant 0 : index
      %c0_13 = arith.constant 0 : index
      %13 = vector.load %arg4[%c0_12, %c0_13] : memref<1x128xf32, #tpu.memory_space<vmem>>, vector<1x128xf32>
      %14 = vector.broadcast %13 : vector<1x128xf32> to vector<8x128xf32>
      %15 = arith.addf %12, %14 : vector<8x128xf32>
      %c0_14 = arith.constant 0 : index
      %c0_15 = arith.constant 0 : index
      %16 = vector.load %arg5[%c0_14, %c0_15] : memref<8x128xf32, #tpu.memory_space<vmem>>, vector<8x128xf32>
      tpu.vector_store %arg5[%c0_14, %c0_15], %15 {strides = array<i32>} : memref<8x128xf32, #tpu.memory_space<vmem>>, vector<8x128xf32>,
    } else {
    }
    return
  }
  func.func @transform_0(%arg0: i32, %arg1: i32) -> (i32, i32) {
    %c0_i32 = arith.constant 0 : i32
    return %arg0, %arg1 : i32, i32
  }
  func.func @transform_1(%arg0: i32, %arg1: i32) -> (i32, i32) {
    %c0_i32 = arith.constant 0 : i32
    %c0_i32_0 = arith.constant 0 : i32
    return %arg1, %c0_i32 : i32, i32
  }
  func.func @transform_2(%arg0: i32, %arg1: i32) -> (i32, i32) {
    %c0_i32 = arith.constant 0 : i32
    %c0_i32_0 = arith.constant 0 : i32
    %c0_i32_1 = arith.constant 0 : i32
    return %c0_i32, %c0_i32_0 : i32, i32
  }
  func.func @transform_3(%arg0: i32, %arg1: i32) -> (i32, i32) {
    %c0_i32 = arith.constant 0 : i32
    %c0_i32_0 = arith.constant 0 : i32
    return %arg0, %c0_i32 : i32, i32
  }
}

</mosaic_0001>

<bundles_post_ra>
// kernel: linear_norm_forward.1
= control target key start
LH: loop header
LB: loop body
LE: loop exit
PB: predicated region body
PF: predicated region fallthrough
CT: control target
= control target key end

     0   :  { %s418_s12 = smov 0   ;;  %s420_s13 = smov 0   ;;  %s463_s0 = inlined_call_operand.vmem [shape: f32[16,32], index: 0, kind: input, shape index: {}]   ;;  %s464_s1 = inlined_call_operand.vmem [shape: f32[32,128], index: 1, kind: input, shape index: {}]   ;;  %s465_s2 = inlined_call_operand.vmem [shape: f32[1,128], index: 2, kind: input, shape index: {}]   ;;  %s466_s3 = inlined_call_operand.vmem [shape: f32[16,128], index: 3, kind: output, shape index: {}]  }
   0x1   :  { %s422_s14 = smov 0  }
   0x2 LB: > { %s25_s15 = sadd.s32 1, %s392_s13  ;;  %p343_p0 = scmp.ge.s32.totalorder %s396_s14, 1  ;;  %s396_s14 = sphi %s422_s14, %s13_s14   ;;  %s392_s13 = sphi %s420_s13, %s468_s13   ;;  %s388_s12 = sphi %s418_s12, %s467_s12  }
   0x3   : > { %p27_p1 = scmp.ge.s32.totalorder %s25_s15, 2  ;;  %p164_p2 = scmp.lt.s32.totalorder %s396_s14, 3 }
   0x5   : > { %s470_s15 = smov (%p27_p1, %s25_s15), 0  ;;  %p165_p3 = pnand %p343_p0, %p164_p2 }
   0x6   : > { %p194_p4 = scmp.lt.s32.totalorder (!%p165_p3), %s388_s12, 1 }
   0x7   : > { %168 = sbr.rel (%p165_p3) target bundleno = 149 (0x95), region = 32 }
   0xc   : > { %v221_v0 = vld [vmem:[%s464_s1 + $0x18] sm:$0xff]  ;;  %v220_v1 = vld [vmem:[%s464_s1 + $0x10] sm:$0xff]  ;;  %v219_v2 = vld [vmem:[%s464_s1 + $0x8] sm:$0xff]  ;;  %s472_s12 = smov (!%p194_p4, %s388_s12), 1  ;;  %vm222_vm0 = vcmask 261120  }
   0xd   : > { %238 = vmatpush.msra.mxu0 %v221_v0  ;;  %v218_v3 = vld [vmem:[%s464_s1] sm:$0xff]  ;;  %s344_s24 = sshll.u32 %s472_s12, 3 }
   0xe   : > { %s200_s27 = scalar_lea.vmem %s463_s0, %s344_s24  ;;  %v373_v5 = vld [vmem:[%s465_s2] ss:$0 sm:$0xff]  ;;  %s210_s5 = scalar_lea.vmem %s466_s3, %s344_s24 }
   0xf   : > { %239 = vmatpush.msra.mxu0 %v220_v1  ;;  %v217_v4 = vld [vmem:[%s200_s27] sm:$0xff] }
  0x11   : > { %240 = vmatpush.msra.mxu0 %v219_v2 }
  0x13   : > { %241 = vmatpush.msra.mxu0 %v218_v3 }
  0x14   : > { %346 = vmatmul.msk.f32.vlgmr.msra.gmra.mxu0 %vm222_vm0, %v217_v4 }
  0x91   : > { %v243_v6 = vpop.f32.mrf.mxu0 }
  0x92   : > { %v256_v7 = vadd.f32 %v373_v5, %v243_v6 }
  0x94   : > { %257 = vst [vmem:[%s210_s5] sm:$0xff] %v256_v7 }
  0x95 PF: > { %s13_s14 = sadd.s32 1, %s396_s14   ;;  %s467_s12 = smov %s392_s13 }
  0x96   : > { %p10_p5 = scmp.ge.s32.totalorder %s13_s14, 4   ;;  %s468_s13 = smov %s470_s15 }
  0x98   :  { %12 = sbr.rel (!%p10_p5) target bundleno = 2 (0x2), region = 73 }

</bundles_post_ra>
